<compile_context>
chip_gen: v7x
topology: tpu7x:2x2x1
jax: 0.10.0
libtpu: 0.0.40
codegen_flags: <defaults>
</compile_context>

<pallas_src>
import functools

import numpy as np
import jax
import jax.numpy as jnp
from jax import lax
from jax.experimental import pallas as pl
from jax.experimental.pallas import tpu as pltpu

_BN_EPS = 1e-5


# ----------------------------- Pallas kernels ------------------------------

def _conv_kernel(p_ref, w_ref, b_ref, o_ref, *, act):
    """One conv(+folded BN)(+activation), transposed / lane-dense.

    p_ref: (K, TM) bf16 patches^T         w_ref: (Cout, K) bf16 (BN scale folded)
    b_ref: (Cout, 1) f32 folded BN bias   o_ref: (Cout, TM)
    """
    acc = jnp.dot(w_ref[...], p_ref[...], preferred_element_type=jnp.float32)
    out = acc + b_ref[...]
    if act == "relu":
        out = jnp.maximum(out, 0.0)
    elif act == "sigmoid":
        out = 0.5 * (jnp.tanh(0.5 * out) + 1.0)   # stable sigmoid via EUP tanh
    o_ref[...] = out.astype(o_ref.dtype)


def _head_kernel(p_ref, w1_ref, b1_ref, w2_ref, b2_ref, o_ref):
    """head1 (3x3 -> 16, BN, ReLU) + head2 (1x1 -> 1, Sigmoid), fused.

    p_ref: (K, TM) bf16     w1_ref: (16, K) bf16    b1_ref: (16, 1) f32
    w2_ref: (1, 16) bf16    b2_ref: (1, 1) f32      o_ref: (1, TM) f32
    """
    h = jnp.dot(w1_ref[...], p_ref[...], preferred_element_type=jnp.float32)
    h = jnp.maximum(h + b1_ref[...], 0.0)
    o = jnp.dot(w2_ref[...], h.astype(jnp.bfloat16),
                preferred_element_type=jnp.float32) + b2_ref[...]
    o_ref[...] = (0.5 * (jnp.tanh(0.5 * o) + 1.0)).astype(o_ref.dtype)


# ------------------------------- glue / setup -------------------------------

def _round_up(x, m):
    return (x + m - 1) // m * m


def _tiles(m):
    """(padded M, lane tile): largest multiple of 128 (<=1024) dividing padded M."""
    m_pad = _round_up(m, 128)
    for tm in range(1024, 127, -128):
        if m_pad % tm == 0:
            return m_pad, tm
    return m_pad, 128


def _patchesT(x, kh, kw, stride, pad):
    """Channel-major x (Cin, N, H, W) bf16 -> transposed patch matrix.

    Returns ((KH*KW*Cin, N*Ho*Wo) bf16, (N, Ho, Wo)).  Row order is
    (tap_i*KW + tap_j)*Cin + ci, matching the weight layout built at init.
    Strided taps mean stride-2 convs compute only the needed outputs.
    """
    cin, n, h, w = x.shape
    if pad:
        x = jnp.pad(x, ((0, 0), (0, 0), (pad, pad), (pad, pad)))
    hp, wp = h + 2 * pad, w + 2 * pad
    ho = (hp - kh) // stride + 1
    wo = (wp - kw) // stride + 1
    taps = []
    for i in range(kh):
        for j in range(kw):
            taps.append(x[:, :, i:i + (ho - 1) * stride + 1:stride,
                          j:j + (wo - 1) * stride + 1:stride])
    p = jnp.concatenate(taps, axis=0)                # (KH*KW*Cin, N, Ho, Wo)
    return p.reshape(kh * kw * cin, n * ho * wo), (n, ho, wo)


def _run_lane_dense(kernel_fn, patches, consts, const_specs, cout, out_dtype):
    """Launch a lane-dense (Cout, M)-output kernel, tiled over the M (lane) axis."""
    k, m = patches.shape
    m_pad, tm = _tiles(m)
    if m_pad != m:
        patches = jnp.pad(patches, ((0, 0), (0, m_pad - m)))
    grid = (m_pad // tm,)
    out = pl.pallas_call(
        kernel_fn,
        out_shape=jax.ShapeDtypeStruct((cout, m_pad), out_dtype),
        grid=grid,
        in_specs=[pl.BlockSpec((k, tm), lambda i: (0, i))] + const_specs,
        out_specs=pl.BlockSpec((cout, tm), lambda i: (0, i)),
        compiler_params=pltpu.CompilerParams(
            dimension_semantics=(("parallel",) if grid[0] > 1 else ("arbitrary",))),
    )(patches, *consts)
    return out if m_pad == m else out[:, :m]


def _conv_from_patches(patches, layer, act, out_dtype):
    cout = layer["w"].shape[0]
    specs = [pl.BlockSpec(layer["w"].shape, lambda i: (0, 0)),
             pl.BlockSpec(layer["b"].shape, lambda i: (0, 0))]
    return _run_lane_dense(functools.partial(_conv_kernel, act=act),
                           patches, (layer["w"], layer["b"]), specs,
                           cout, out_dtype)


def conv_bn_act(x, layer, *, kh, kw, stride, pad, act):
    """Channel-major x (Cin,N,H,W) -> (Cout,N,Ho,Wo); conv + folded BN + act."""
    patches, (n, ho, wo) = _patchesT(x, kh, kw, stride, pad)
    out = _conv_from_patches(patches, layer, act, jnp.bfloat16)
    return out.reshape(layer["w"].shape[0], n, ho, wo)


def fused_res_tail(main, x_skip, layer, *, kh, kw, pad):
    """ReLU( conv2(main) + 1x1-stride2-skip(x_skip) ) as ONE matmul (K-concat)."""
    p2, (n, ho, wo) = _patchesT(main, kh, kw, 1, pad)
    ps, _ = _patchesT(x_skip, 1, 1, 2, 0)
    patches = jnp.concatenate([p2, ps], axis=0)
    out = _conv_from_patches(patches, layer, "relu", jnp.bfloat16)
    return out.reshape(layer["w"].shape[0], n, ho, wo)


def head_fused(x, h1, h2):
    """head1 (3x3->16, BN, ReLU) + head2 (1x1->1, Sigmoid) in one pallas_call."""
    patches, (n, ho, wo) = _patchesT(x, 3, 3, 1, 1)
    consts = (h1["w"], h1["b"], h2["w"], h2["b"])
    specs = [pl.BlockSpec(h1["w"].shape, lambda i: (0, 0)),
             pl.BlockSpec(h1["b"].shape, lambda i: (0, 0)),
             pl.BlockSpec(h2["w"].shape, lambda i: (0, 0)),
             pl.BlockSpec(h2["b"].shape, lambda i: (0, 0))]
    out = _run_lane_dense(_head_kernel, patches, consts, specs, 1, jnp.float32)
    return out.reshape(1, n, ho, wo)


# ------------------------------- parameters ---------------------------------

def _init_conv_bn(key, kh, kw, cin, cout, *, with_bn=True):
    k1, k2, k3, k4, k5, k6 = jax.random.split(key, 6)
    fan_in = kh * kw * cin
    w4 = jax.random.normal(k1, (kh, kw, cin, cout), jnp.float32) / np.sqrt(fan_in)
    b_conv = 0.1 * jax.random.normal(k2, (cout,), jnp.float32)
    if with_bn:
        gamma = 1.0 + 0.1 * jax.random.normal(k3, (cout,), jnp.float32)
        beta = 0.1 * jax.random.normal(k4, (cout,), jnp.float32)
        run_mean = 0.05 * jax.random.normal(k5, (cout,), jnp.float32)
        run_var = 1.0 + 0.1 * jax.random.uniform(k6, (cout,), jnp.float32)
        # BN(conv(x)+b) = conv(x)*s + (beta - mean*s + b*s),  s = gamma/sqrt(var+eps)
        s = gamma / jnp.sqrt(run_var + _BN_EPS)
        b = beta - run_mean * s + b_conv * s
    else:
        s = jnp.ones((cout,), jnp.float32)
        b = b_conv
    # transposed, matmul-ready weight with the BN scale folded in: (Cout, KH*KW*Cin)
    w_t = jnp.transpose(w4, (3, 0, 1, 2)).reshape(cout, kh * kw * cin)
    return {
        "w": (w_t * s[:, None]).astype(jnp.bfloat16),
        "b": b.reshape(cout, 1),
        # f32 / unfolded copies kept only for the pure-JAX reference check
        "w_f32": w4, "scale": s, "bias": b,
    }


def init_encoder_params(key, mid_c, n_downsampling, out_kernel, in_kernel):
    keys = jax.random.split(key, 3 + 3 * n_downsampling)
    params = {"stem": _init_conv_bn(keys[0], out_kernel, out_kernel, 1, mid_c)}
    down, ki = [], 1
    for i in range(n_downsampling):
        cin = mid_c * (2 ** i)
        cout = cin * 2
        conv1 = _init_conv_bn(keys[ki], in_kernel, in_kernel, cin, cout)
        conv2 = _init_conv_bn(keys[ki + 1], in_kernel, in_kernel, cout, cout)
        skip = _init_conv_bn(keys[ki + 2], 1, 1, cin, cout)
        down.append({
            "conv1": conv1, "conv2": conv2, "skip": skip,
            # conv2 + 1x1 skip collapsed to a single matmul: K-concat of folded
            # weights, biases summed (valid because BN scales are pre-folded).
            "fused": {"w": jnp.concatenate([conv2["w"], skip["w"]], axis=1),
                      "b": conv2["b"] + skip["b"]},
        })
        ki += 3
    params["down"] = down
    c_last = mid_c * (2 ** n_downsampling)
    params["head1"] = _init_conv_bn(keys[ki], 3, 3, c_last, 16)
    params["head2"] = _init_conv_bn(keys[ki + 1], 1, 1, 16, 1, with_bn=False)
    return params


# -------------------------------- forward -----------------------------------

def stride_res_bn_encoder_c1(params, x_nchw, *, n_downsampling, out_kernel, in_kernel):
    n, c, h, w = x_nchw.shape
    # Cin == 1: NCHW -> channel-major (C, N, H, W) is a pure reshape.
    x = x_nchw.astype(jnp.bfloat16).reshape(c, n, h, w)
    # stem: Conv(1 -> mid_c, out_kernel, pad=out_kernel//2) + BN + ReLU
    x = conv_bn_act(x, params["stem"], kh=out_kernel, kw=out_kernel,
                    stride=1, pad=out_kernel // 2, act="relu")
    for i in range(n_downsampling):
        blk = params["down"][i]
        main = conv_bn_act(x, blk["conv1"], kh=in_kernel, kw=in_kernel,
                           stride=2, pad=in_kernel // 2, act="relu")
        x = fused_res_tail(main, x, blk["fused"],
                           kh=in_kernel, kw=in_kernel, pad=in_kernel // 2)
    # head: Conv(->16, 3x3, pad 1) + BN + ReLU + Conv(16->1, 1x1) + Sigmoid (fused)
    y = head_fused(x, params["head1"], params["head2"])      # (1, N, Ho, Wo) f32
    _, n2, ho, wo = y.shape
    return y.reshape(n2, 1, ho, wo)   # Cout == 1: channel-major -> NCHW pure reshape


# --------------------------- pure-JAX reference ------------------------------

def _ref_forward(params, x_nchw, *, n_downsampling, out_kernel, in_kernel):
    def conv(x, p, stride, pad, act):
        y = lax.conv_general_dilated(
            x, p["w_f32"], window_strides=(stride, stride),
            padding=[(pad, pad), (pad, pad)],
            dimension_numbers=("NHWC", "HWIO", "NHWC"))
        y = y * p["scale"].reshape(1, 1, 1, -1) + p["bias"].reshape(1, 1, 1, -1)
        if act == "relu":
            y = jnp.maximum(y, 0.0)
        elif act == "sigmoid":
            y = jax.nn.sigmoid(y)
        return y

    n, c, h, w = x_nchw.shape
    x = x_nchw.reshape(n, h, w, c)
    x = conv(x, params["stem"], 1, out_kernel // 2, "relu")
    for i in range(n_downsampling):
        blk = params["down"][i]
        main = conv(x, blk["conv1"], 2, in_kernel // 2, "relu")
        main = conv(main, blk["conv2"], 1, in_kernel // 2, "none")
        skip = conv(x, blk["skip"], 2, 0, "none")
        x = jnp.maximum(main + skip, 0.0)
    x = conv(x, params["head1"], 1, 1, "relu")
    x = conv(x, params["head2"], 1, 0, "sigmoid")
    n2, ho, wo, co = x.shape
    return x.reshape(n2, co, ho, wo)


if __name__ == "__main__":
    mid_c, n_down, out_k, in_k = 4, 2, 7, 3
    key = jax.random.PRNGKey(0)
    pkey, xkey = jax.random.split(key)
    params = init_encoder_params(pkey, mid_c, n_down, out_k, in_k)

    # PyTorch-style NCHW input, 1 channel (the module hard-codes Cin=1).
    x = jax.random.normal(xkey, (2, 1, 16, 16), jnp.float32)

    fwd = jax.jit(functools.partial(stride_res_bn_encoder_c1,
                                    n_downsampling=n_down,
                                    out_kernel=out_k, in_kernel=in_k))
    y = jax.block_until_ready(fwd(params, x))

    assert y.shape == (2, 1, 16 // (2 ** n_down), 16 // (2 ** n_down)), y.shape
    assert bool(jnp.all((y >= 0.0) & (y <= 1.0)))       # sigmoid output range

    # correctness check vs. pure-JAX f32 reference (bf16 operands -> loose tol)
    y_ref = jax.block_until_ready(
        _ref_forward(params, x, n_downsampling=n_down,
                     out_kernel=out_k, in_kernel=in_k))
    err = float(jnp.max(jnp.abs(y - y_ref)))
    assert err < 5e-2, err

    print("KERNEL_OK")
</pallas_src>

<mosaic_0001>
module attributes {stable_mosaic.version = 11 : i64} {
  func.func @_conv_kernel(%arg0: i32, %arg1: memref<49x512xbf16, #tpu.memory_space<vmem>>, %arg2: memref<4x49xbf16, #tpu.memory_space<vmem>>, %arg3: memref<4x1xf32, #tpu.memory_space<vmem>>, %arg4: memref<4x512xbf16, #tpu.memory_space<vmem>>) attributes {dimension_semantics = [#tpu.dimension_semantics<arbitrary>], iteration_bounds = array<i64: 1>, scalar_prefetch = 0 : i64, scratch_operands = 0 : i64, tpu.core_type = #tpu.core_type<tc>, window_params = [{transform_indices = @transform_0, window_bounds = array<i64: 49, 512>}, {pipeline_mode = #tpu.pipeline_mode<synchronous>, transform_indices = @transform_1, window_bounds = array<i64: 4, 49>}, {pipeline_mode = #tpu.pipeline_mode<synchronous>, transform_indices = @transform_2, window_bounds = array<i64: 4, 1>}, {transform_indices = @transform_3, window_bounds = array<i64: 4, 512>}]} {
    %c0 = arith.constant 0 : index
    %c0_0 = arith.constant 0 : index
    %0 = vector.load %arg2[%c0, %c0_0] : memref<4x49xbf16, #tpu.memory_space<vmem>>, vector<4x49xbf16>
    %c0_1 = arith.constant 0 : index
    %c0_2 = arith.constant 0 : index
    %1 = vector.load %arg1[%c0_1, %c0_2] : memref<49x512xbf16, #tpu.memory_space<vmem>>, vector<49x512xbf16>
    %cst = arith.constant dense<0.000000e+00> : vector<4x512xf32>
    %2 = tpu.matmul %0, %1, %cst {dimension_numbers = #tpu.dot_dimension_numbers<[1], [0], [0], [1], [0, 0, 1, 1], [], []>} : vector<4x49xbf16>, vector<49x512xbf16>, vector<4x512xf32> -> vector<4x512xf32>
    %c0_3 = arith.constant 0 : index
    %c0_4 = arith.constant 0 : index
    %3 = vector.load %arg3[%c0_3, %c0_4] : memref<4x1xf32, #tpu.memory_space<vmem>>, vector<4x1xf32>
    %4 = vector.broadcast %3 : vector<4x1xf32> to vector<4x512xf32>
    %5 = arith.addf %2, %4 : vector<4x512xf32>
    %cst_5 = arith.constant 0.000000e+00 : f32
    %6 = vector.broadcast %cst_5 : f32 to vector<4x512xf32>
    %7 = arith.maximumf %5, %6 : vector<4x512xf32>
    %8 = arith.truncf %7 : vector<4x512xf32> to vector<4x512xbf16>
    %c0_6 = arith.constant 0 : index
    %c0_7 = arith.constant 0 : index
    %9 = vector.load %arg4[%c0_6, %c0_7] : memref<4x512xbf16, #tpu.memory_space<vmem>>, vector<4x512xbf16>
    tpu.vector_store %arg4[%c0_6, %c0_7], %8 {strides = array<i32>} : memref<4x512xbf16, #tpu.memory_space<vmem>>, vector<4x512xbf16>,
    return
  }
  func.func @transform_0(%arg0: i32) -> (i32, i32) {
    %c0_i32 = arith.constant 0 : i32
    %c0_i32_0 = arith.constant 0 : i32
    return %c0_i32, %arg0 : i32, i32
  }
  func.func @transform_1(%arg0: i32) -> (i32, i32) {
    %c0_i32 = arith.constant 0 : i32
    %c0_i32_0 = arith.constant 0 : i32
    %c0_i32_1 = arith.constant 0 : i32
    return %c0_i32, %c0_i32_0 : i32, i32
  }
  func.func @transform_2(%arg0: i32) -> (i32, i32) {
    %c0_i32 = arith.constant 0 : i32
    %c0_i32_0 = arith.constant 0 : i32
    %c0_i32_1 = arith.constant 0 : i32
    return %c0_i32, %c0_i32_0 : i32, i32
  }
  func.func @transform_3(%arg0: i32) -> (i32, i32) {
    %c0_i32 = arith.constant 0 : i32
    %c0_i32_0 = arith.constant 0 : i32
    return %c0_i32, %arg0 : i32, i32
  }
}

module attributes {stable_mosaic.version = 11 : i64} {
  func.func @_conv_kernel(%arg0: i32, %arg1: memref<36x128xbf16, #tpu.memory_space<vmem>>, %arg2: memref<8x36xbf16, #tpu.memory_space<vmem>>, %arg3: memref<8x1xf32, #tpu.memory_space<vmem>>, %arg4: memref<8x128xbf16, #tpu.memory_space<vmem>>) attributes {dimension_semantics = [#tpu.dimension_semantics<arbitrary>], iteration_bounds = array<i64: 1>, scalar_prefetch = 0 : i64, scratch_operands = 0 : i64, tpu.core_type = #tpu.core_type<tc>, window_params = [{transform_indices = @transform_0, window_bounds = array<i64: 36, 128>}, {pipeline_mode = #tpu.pipeline_mode<synchronous>, transform_indices = @transform_1, window_bounds = array<i64: 8, 36>}, {pipeline_mode = #tpu.pipeline_mode<synchronous>, transform_indices = @transform_2, window_bounds = array<i64: 8, 1>}, {transform_indices = @transform_3, window_bounds = array<i64: 8, 128>}]} {
    %c0 = arith.constant 0 : index
    %c0_0 = arith.constant 0 : index
    %0 = vector.load %arg2[%c0, %c0_0] : memref<8x36xbf16, #tpu.memory_space<vmem>>, vector<8x36xbf16>
    %c0_1 = arith.constant 0 : index
    %c0_2 = arith.constant 0 : index
    %1 = vector.load %arg1[%c0_1, %c0_2] : memref<36x128xbf16, #tpu.memory_space<vmem>>, vector<36x128xbf16>
    %cst = arith.constant dense<0.000000e+00> : vector<8x128xf32>
    %2 = tpu.matmul %0, %1, %cst {dimension_numbers = #tpu.dot_dimension_numbers<[1], [0], [0], [1], [0, 0, 1, 1], [], []>} : vector<8x36xbf16>, vector<36x128xbf16>, vector<8x128xf32> -> vector<8x128xf32>
    %c0_3 = arith.constant 0 : index
    %c0_4 = arith.constant 0 : index
    %3 = vector.load %arg3[%c0_3, %c0_4] : memref<8x1xf32, #tpu.memory_space<vmem>>, vector<8x1xf32>
    %4 = vector.broadcast %3 : vector<8x1xf32> to vector<8x128xf32>
    %5 = arith.addf %2, %4 : vector<8x128xf32>
    %cst_5 = arith.constant 0.000000e+00 : f32
    %6 = vector.broadcast %cst_5 : f32 to vector<8x128xf32>
    %7 = arith.maximumf %5, %6 : vector<8x128xf32>
    %8 = arith.truncf %7 : vector<8x128xf32> to vector<8x128xbf16>
    %c0_6 = arith.constant 0 : index
    %c0_7 = arith.constant 0 : index
    %9 = vector.load %arg4[%c0_6, %c0_7] : memref<8x128xbf16, #tpu.memory_space<vmem>>, vector<8x128xbf16>
    tpu.vector_store %arg4[%c0_6, %c0_7], %8 {strides = array<i32>} : memref<8x128xbf16, #tpu.memory_space<vmem>>, vector<8x128xbf16>,
    return
  }
  func.func @transform_0(%arg0: i32) -> (i32, i32) {
    %c0_i32 = arith.constant 0 : i32
    %c0_i32_0 = arith.constant 0 : i32
    return %c0_i32, %arg0 : i32, i32
  }
  func.func @transform_1(%arg0: i32) -> (i32, i32) {
    %c0_i32 = arith.constant 0 : i32
    %c0_i32_0 = arith.constant 0 : i32
    %c0_i32_1 = arith.constant 0 : i32
    return %c0_i32, %c0_i32_0 : i32, i32
  }
  func.func @transform_2(%arg0: i32) -> (i32, i32) {
    %c0_i32 = arith.constant 0 : i32
    %c0_i32_0 = arith.constant 0 : i32
    %c0_i32_1 = arith.constant 0 : i32
    return %c0_i32, %c0_i32_0 : i32, i32
  }
  func.func @transform_3(%arg0: i32) -> (i32, i32) {
    %c0_i32 = arith.constant 0 : i32
    %c0_i32_0 = arith.constant 0 : i32
    return %c0_i32, %arg0 : i32, i32
  }
}

module attributes {stable_mosaic.version = 11 : i64} {
  func.func @_conv_kernel(%arg0: i32, %arg1: memref<76x128xbf16, #tpu.memory_space<vmem>>, %arg2: memref<8x76xbf16, #tpu.memory_space<vmem>>, %arg3: memref<8x1xf32, #tpu.memory_space<vmem>>, %arg4: memref<8x128xbf16, #tpu.memory_space<vmem>>) attributes {dimension_semantics = [#tpu.dimension_semantics<arbitrary>], iteration_bounds = array<i64: 1>, scalar_prefetch = 0 : i64, scratch_operands = 0 : i64, tpu.core_type = #tpu.core_type<tc>, window_params = [{transform_indices = @transform_0, window_bounds = array<i64: 76, 128>}, {pipeline_mode = #tpu.pipeline_mode<synchronous>, transform_indices = @transform_1, window_bounds = array<i64: 8, 76>}, {pipeline_mode = #tpu.pipeline_mode<synchronous>, transform_indices = @transform_2, window_bounds = array<i64: 8, 1>}, {transform_indices = @transform_3, window_bounds = array<i64: 8, 128>}]} {
    %c0 = arith.constant 0 : index
    %c0_0 = arith.constant 0 : index
    %0 = vector.load %arg2[%c0, %c0_0] : memref<8x76xbf16, #tpu.memory_space<vmem>>, vector<8x76xbf16>
    %c0_1 = arith.constant 0 : index
    %c0_2 = arith.constant 0 : index
    %1 = vector.load %arg1[%c0_1, %c0_2] : memref<76x128xbf16, #tpu.memory_space<vmem>>, vector<76x128xbf16>
    %cst = arith.constant dense<0.000000e+00> : vector<8x128xf32>
    %2 = tpu.matmul %0, %1, %cst {dimension_numbers = #tpu.dot_dimension_numbers<[1], [0], [0], [1], [0, 0, 1, 1], [], []>} : vector<8x76xbf16>, vector<76x128xbf16>, vector<8x128xf32> -> vector<8x128xf32>
    %c0_3 = arith.constant 0 : index
    %c0_4 = arith.constant 0 : index
    %3 = vector.load %arg3[%c0_3, %c0_4] : memref<8x1xf32, #tpu.memory_space<vmem>>, vector<8x1xf32>
    %4 = vector.broadcast %3 : vector<8x1xf32> to vector<8x128xf32>
    %5 = arith.addf %2, %4 : vector<8x128xf32>
    %cst_5 = arith.constant 0.000000e+00 : f32
    %6 = vector.broadcast %cst_5 : f32 to vector<8x128xf32>
    %7 = arith.maximumf %5, %6 : vector<8x128xf32>
    %8 = arith.truncf %7 : vector<8x128xf32> to vector<8x128xbf16>
    %c0_6 = arith.constant 0 : index
    %c0_7 = arith.constant 0 : index
    %9 = vector.load %arg4[%c0_6, %c0_7] : memref<8x128xbf16, #tpu.memory_space<vmem>>, vector<8x128xbf16>
    tpu.vector_store %arg4[%c0_6, %c0_7], %8 {strides = array<i32>} : memref<8x128xbf16, #tpu.memory_space<vmem>>, vector<8x128xbf16>,
    return
  }
  func.func @transform_0(%arg0: i32) -> (i32, i32) {
    %c0_i32 = arith.constant 0 : i32
    %c0_i32_0 = arith.constant 0 : i32
    return %c0_i32, %arg0 : i32, i32
  }
  func.func @transform_1(%arg0: i32) -> (i32, i32) {
    %c0_i32 = arith.constant 0 : i32
    %c0_i32_0 = arith.constant 0 : i32
    %c0_i32_1 = arith.constant 0 : i32
    return %c0_i32, %c0_i32_0 : i32, i32
  }
  func.func @transform_2(%arg0: i32) -> (i32, i32) {
    %c0_i32 = arith.constant 0 : i32
    %c0_i32_0 = arith.constant 0 : i32
    %c0_i32_1 = arith.constant 0 : i32
    return %c0_i32, %c0_i32_0 : i32, i32
  }
  func.func @transform_3(%arg0: i32) -> (i32, i32) {
    %c0_i32 = arith.constant 0 : i32
    %c0_i32_0 = arith.constant 0 : i32
    return %c0_i32, %arg0 : i32, i32
  }
}

module attributes {stable_mosaic.version = 11 : i64} {
  func.func @_conv_kernel(%arg0: i32, %arg1: memref<72x128xbf16, #tpu.memory_space<vmem>>, %arg2: memref<16x72xbf16, #tpu.memory_space<vmem>>, %arg3: memref<16x1xf32, #tpu.memory_space<vmem>>, %arg4: memref<16x128xbf16, #tpu.memory_space<vmem>>) attributes {dimension_semantics = [#tpu.dimension_semantics<arbitrary>], iteration_bounds = array<i64: 1>, scalar_prefetch = 0 : i64, scratch_operands = 0 : i64, tpu.core_type = #tpu.core_type<tc>, window_params = [{transform_indices = @transform_0, window_bounds = array<i64: 72, 128>}, {pipeline_mode = #tpu.pipeline_mode<synchronous>, transform_indices = @transform_1, window_bounds = array<i64: 16, 72>}, {pipeline_mode = #tpu.pipeline_mode<synchronous>, transform_indices = @transform_2, window_bounds = array<i64: 16, 1>}, {transform_indices = @transform_3, window_bounds = array<i64: 16, 128>}]} {
    %c0 = arith.constant 0 : index
    %c0_0 = arith.constant 0 : index
    %0 = vector.load %arg2[%c0, %c0_0] : memref<16x72xbf16, #tpu.memory_space<vmem>>, vector<16x72xbf16>
    %c0_1 = arith.constant 0 : index
    %c0_2 = arith.constant 0 : index
    %1 = vector.load %arg1[%c0_1, %c0_2] : memref<72x128xbf16, #tpu.memory_space<vmem>>, vector<72x128xbf16>
    %cst = arith.constant dense<0.000000e+00> : vector<16x128xf32>
    %2 = tpu.matmul %0, %1, %cst {dimension_numbers = #tpu.dot_dimension_numbers<[1], [0], [0], [1], [0, 0, 1, 1], [], []>} : vector<16x72xbf16>, vector<72x128xbf16>, vector<16x128xf32> -> vector<16x128xf32>
    %c0_3 = arith.constant 0 : index
    %c0_4 = arith.constant 0 : index
    %3 = vector.load %arg3[%c0_3, %c0_4] : memref<16x1xf32, #tpu.memory_space<vmem>>, vector<16x1xf32>
    %4 = vector.broadcast %3 : vector<16x1xf32> to vector<16x128xf32>
    %5 = arith.addf %2, %4 : vector<16x128xf32>
    %cst_5 = arith.constant 0.000000e+00 : f32
    %6 = vector.broadcast %cst_5 : f32 to vector<16x128xf32>
    %7 = arith.maximumf %5, %6 : vector<16x128xf32>
    %8 = arith.truncf %7 : vector<16x128xf32> to vector<16x128xbf16>
    %c0_6 = arith.constant 0 : index
    %c0_7 = arith.constant 0 : index
    %9 = vector.load %arg4[%c0_6, %c0_7] : memref<16x128xbf16, #tpu.memory_space<vmem>>, vector<16x128xbf16>
    tpu.vector_store %arg4[%c0_6, %c0_7], %8 {strides = array<i32>} : memref<16x128xbf16, #tpu.memory_space<vmem>>, vector<16x128xbf16>,
    return
  }
  func.func @transform_0(%arg0: i32) -> (i32, i32) {
    %c0_i32 = arith.constant 0 : i32
    %c0_i32_0 = arith.constant 0 : i32
    return %c0_i32, %arg0 : i32, i32
  }
  func.func @transform_1(%arg0: i32) -> (i32, i32) {
    %c0_i32 = arith.constant 0 : i32
    %c0_i32_0 = arith.constant 0 : i32
    %c0_i32_1 = arith.constant 0 : i32
    return %c0_i32, %c0_i32_0 : i32, i32
  }
  func.func @transform_2(%arg0: i32) -> (i32, i32) {
    %c0_i32 = arith.constant 0 : i32
    %c0_i32_0 = arith.constant 0 : i32
    %c0_i32_1 = arith.constant 0 : i32
    return %c0_i32, %c0_i32_0 : i32, i32
  }
  func.func @transform_3(%arg0: i32) -> (i32, i32) {
    %c0_i32 = arith.constant 0 : i32
    %c0_i32_0 = arith.constant 0 : i32
    return %c0_i32, %arg0 : i32, i32
  }
}

module attributes {stable_mosaic.version = 11 : i64} {
  func.func @_conv_kernel(%arg0: i32, %arg1: memref<152x128xbf16, #tpu.memory_space<vmem>>, %arg2: memref<16x152xbf16, #tpu.memory_space<vmem>>, %arg3: memref<16x1xf32, #tpu.memory_space<vmem>>, %arg4: memref<16x128xbf16, #tpu.memory_space<vmem>>) attributes {dimension_semantics = [#tpu.dimension_semantics<arbitrary>], iteration_bounds = array<i64: 1>, scalar_prefetch = 0 : i64, scratch_operands = 0 : i64, tpu.core_type = #tpu.core_type<tc>, window_params = [{transform_indices = @transform_0, window_bounds = array<i64: 152, 128>}, {pipeline_mode = #tpu.pipeline_mode<synchronous>, transform_indices = @transform_1, window_bounds = array<i64: 16, 152>}, {pipeline_mode = #tpu.pipeline_mode<synchronous>, transform_indices = @transform_2, window_bounds = array<i64: 16, 1>}, {transform_indices = @transform_3, window_bounds = array<i64: 16, 128>}]} {
    %c0 = arith.constant 0 : index
    %c0_0 = arith.constant 0 : index
    %0 = vector.load %arg2[%c0, %c0_0] : memref<16x152xbf16, #tpu.memory_space<vmem>>, vector<16x152xbf16>
    %c0_1 = arith.constant 0 : index
    %c0_2 = arith.constant 0 : index
    %1 = vector.load %arg1[%c0_1, %c0_2] : memref<152x128xbf16, #tpu.memory_space<vmem>>, vector<152x128xbf16>
    %cst = arith.constant dense<0.000000e+00> : vector<16x128xf32>
    %2 = tpu.matmul %0, %1, %cst {dimension_numbers = #tpu.dot_dimension_numbers<[1], [0], [0], [1], [0, 0, 1, 1], [], []>} : vector<16x152xbf16>, vector<152x128xbf16>, vector<16x128xf32> -> vector<16x128xf32>
    %c0_3 = arith.constant 0 : index
    %c0_4 = arith.constant 0 : index
    %3 = vector.load %arg3[%c0_3, %c0_4] : memref<16x1xf32, #tpu.memory_space<vmem>>, vector<16x1xf32>
    %4 = vector.broadcast %3 : vector<16x1xf32> to vector<16x128xf32>
    %5 = arith.addf %2, %4 : vector<16x128xf32>
    %cst_5 = arith.constant 0.000000e+00 : f32
    %6 = vector.broadcast %cst_5 : f32 to vector<16x128xf32>
    %7 = arith.maximumf %5, %6 : vector<16x128xf32>
    %8 = arith.truncf %7 : vector<16x128xf32> to vector<16x128xbf16>
    %c0_6 = arith.constant 0 : index
    %c0_7 = arith.constant 0 : index
    %9 = vector.load %arg4[%c0_6, %c0_7] : memref<16x128xbf16, #tpu.memory_space<vmem>>, vector<16x128xbf16>
    tpu.vector_store %arg4[%c0_6, %c0_7], %8 {strides = array<i32>} : memref<16x128xbf16, #tpu.memory_space<vmem>>, vector<16x128xbf16>,
    return
  }
  func.func @transform_0(%arg0: i32) -> (i32, i32) {
    %c0_i32 = arith.constant 0 : i32
    %c0_i32_0 = arith.constant 0 : i32
    return %c0_i32, %arg0 : i32, i32
  }
  func.func @transform_1(%arg0: i32) -> (i32, i32) {
    %c0_i32 = arith.constant 0 : i32
    %c0_i32_0 = arith.constant 0 : i32
    %c0_i32_1 = arith.constant 0 : i32
    return %c0_i32, %c0_i32_0 : i32, i32
  }
  func.func @transform_2(%arg0: i32) -> (i32, i32) {
    %c0_i32 = arith.constant 0 : i32
    %c0_i32_0 = arith.constant 0 : i32
    %c0_i32_1 = arith.constant 0 : i32
    return %c0_i32, %c0_i32_0 : i32, i32
  }
  func.func @transform_3(%arg0: i32) -> (i32, i32) {
    %c0_i32 = arith.constant 0 : i32
    %c0_i32_0 = arith.constant 0 : i32
    return %c0_i32, %arg0 : i32, i32
  }
}

module attributes {stable_mosaic.version = 11 : i64} {
  func.func @_head_kernel(%arg0: i32, %arg1: memref<144x128xbf16, #tpu.memory_space<vmem>>, %arg2: memref<16x144xbf16, #tpu.memory_space<vmem>>, %arg3: memref<16x1xf32, #tpu.memory_space<vmem>>, %arg4: memref<1x16xbf16, #tpu.memory_space<vmem>>, %arg5: memref<1x1xf32, #tpu.memory_space<vmem>>, %arg6: memref<1x128xf32, #tpu.memory_space<vmem>>) attributes {dimension_semantics = [#tpu.dimension_semantics<arbitrary>], iteration_bounds = array<i64: 1>, scalar_prefetch = 0 : i64, scratch_operands = 0 : i64, tpu.core_type = #tpu.core_type<tc>, window_params = [{transform_indices = @transform_0, window_bounds = array<i64: 144, 128>}, {pipeline_mode = #tpu.pipeline_mode<synchronous>, transform_indices = @transform_1, window_bounds = array<i64: 16, 144>}, {pipeline_mode = #tpu.pipeline_mode<synchronous>, transform_indices = @transform_2, window_bounds = array<i64: 16, 1>}, {pipeline_mode = #tpu.pipeline_mode<synchronous>, transform_indices = @transform_3, window_bounds = array<i64: 1, 16>}, {pipeline_mode = #tpu.pipeline_mode<synchronous>, transform_indices = @transform_4, window_bounds = array<i64: 1, 1>}, {transform_indices = @transform_5, window_bounds = array<i64: 1, 128>}]} {
    %c0 = arith.constant 0 : index
    %c0_0 = arith.constant 0 : index
    %0 = vector.load %arg2[%c0, %c0_0] : memref<16x144xbf16, #tpu.memory_space<vmem>>, vector<16x144xbf16>
    %c0_1 = arith.constant 0 : index
    %c0_2 = arith.constant 0 : index
    %1 = vector.load %arg1[%c0_1, %c0_2] : memref<144x128xbf16, #tpu.memory_space<vmem>>, vector<144x128xbf16>
    %cst = arith.constant dense<0.000000e+00> : vector<16x128xf32>
    %2 = tpu.matmul %0, %1, %cst {dimension_numbers = #tpu.dot_dimension_numbers<[1], [0], [0], [1], [0, 0, 1, 1], [], []>} : vector<16x144xbf16>, vector<144x128xbf16>, vector<16x128xf32> -> vector<16x128xf32>
    %c0_3 = arith.constant 0 : index
    %c0_4 = arith.constant 0 : index
    %3 = vector.load %arg3[%c0_3, %c0_4] : memref<16x1xf32, #tpu.memory_space<vmem>>, vector<16x1xf32>
    %4 = vector.broadcast %3 : vector<16x1xf32> to vector<16x128xf32>
    %5 = arith.addf %2, %4 : vector<16x128xf32>
    %cst_5 = arith.constant 0.000000e+00 : f32
    %6 = vector.broadcast %cst_5 : f32 to vector<16x128xf32>
    %7 = arith.maximumf %5, %6 : vector<16x128xf32>
    %c0_6 = arith.constant 0 : index
    %c0_7 = arith.constant 0 : index
    %8 = vector.load %arg4[%c0_6, %c0_7] : memref<1x16xbf16, #tpu.memory_space<vmem>>, vector<1x16xbf16>
    %9 = arith.truncf %7 : vector<16x128xf32> to vector<16x128xbf16>
    %cst_8 = arith.constant dense<0.000000e+00> : vector<1x128xf32>
    %10 = tpu.matmul %8, %9, %cst_8 {dimension_numbers = #tpu.dot_dimension_numbers<[1], [0], [0], [1], [0, 0, 1, 1], [], []>} : vector<1x16xbf16>, vector<16x128xbf16>, vector<1x128xf32> -> vector<1x128xf32>
    %c0_9 = arith.constant 0 : index
    %c0_10 = arith.constant 0 : index
    %11 = vector.load %arg5[%c0_9, %c0_10] : memref<1x1xf32, #tpu.memory_space<vmem>>, vector<1x1xf32>
    %12 = vector.broadcast %11 : vector<1x1xf32> to vector<1x128xf32>
    %13 = arith.addf %10, %12 : vector<1x128xf32>
    %cst_11 = arith.constant 5.000000e-01 : f32
    %14 = vector.broadcast %cst_11 : f32 to vector<1x128xf32>
    %15 = arith.mulf %14, %13 : vector<1x128xf32>
    %16 = math.tanh %15 : vector<1x128xf32>
    %cst_12 = arith.constant 1.000000e+00 : f32
    %17 = vector.broadcast %cst_12 : f32 to vector<1x128xf32>
    %18 = arith.addf %16, %17 : vector<1x128xf32>
    %cst_13 = arith.constant 5.000000e-01 : f32
    %19 = vector.broadcast %cst_13 : f32 to vector<1x128xf32>
    %20 = arith.mulf %19, %18 : vector<1x128xf32>
    %c0_14 = arith.constant 0 : index
    %c0_15 = arith.constant 0 : index
    %21 = vector.load %arg6[%c0_14, %c0_15] : memref<1x128xf32, #tpu.memory_space<vmem>>, vector<1x128xf32>
    tpu.vector_store %arg6[%c0_14, %c0_15], %20 {strides = array<i32>} : memref<1x128xf32, #tpu.memory_space<vmem>>, vector<1x128xf32>,
    return
  }
  func.func @transform_0(%arg0: i32) -> (i32, i32) {
    %c0_i32 = arith.constant 0 : i32
    %c0_i32_0 = arith.constant 0 : i32
    return %c0_i32, %arg0 : i32, i32
  }
  func.func @transform_1(%arg0: i32) -> (i32, i32) {
    %c0_i32 = arith.constant 0 : i32
    %c0_i32_0 = arith.constant 0 : i32
    %c0_i32_1 = arith.constant 0 : i32
    return %c0_i32, %c0_i32_0 : i32, i32
  }
  func.func @transform_2(%arg0: i32) -> (i32, i32) {
    %c0_i32 = arith.constant 0 : i32
    %c0_i32_0 = arith.constant 0 : i32
    %c0_i32_1 = arith.constant 0 : i32
    return %c0_i32, %c0_i32_0 : i32, i32
  }
  func.func @transform_3(%arg0: i32) -> (i32, i32) {
    %c0_i32 = arith.constant 0 : i32
    %c0_i32_0 = arith.constant 0 : i32
    %c0_i32_1 = arith.constant 0 : i32
    return %c0_i32, %c0_i32_0 : i32, i32
  }
  func.func @transform_4(%arg0: i32) -> (i32, i32) {
    %c0_i32 = arith.constant 0 : i32
    %c0_i32_0 = arith.constant 0 : i32
    %c0_i32_1 = arith.constant 0 : i32
    return %c0_i32, %c0_i32_0 : i32, i32
  }
  func.func @transform_5(%arg0: i32) -> (i32, i32) {
    %c0_i32 = arith.constant 0 : i32
    %c0_i32_0 = arith.constant 0 : i32
    return %c0_i32, %arg0 : i32, i32
  }
}

</mosaic_0001>

<bundles_post_ra>
// kernel: stride_res_bn_encoder_c1.6
= control target key start
LH: loop header
LB: loop body
LE: loop exit
PB: predicated region body
PF: predicated region fallthrough
CT: control target
= control target key end

     0   :  { %v287_v1 = vmov 0   ;;  %vm110_vm0 = vcmask 1040384   ;;  %vm106_vm1 = vcmask 400384   ;;  %v288_v26 = vmov 1983009808   ;;  %s360_s0 = inlined_call_operand.vmem [shape: bf16[49,512], index: 0, kind: input, shape index: {}]   ;;  %s361_s2 = inlined_call_operand.vmem [shape: f32[4,1], index: 2, kind: input, shape index: {}]   ;;  %s362_s1 = inlined_call_operand.vmem [shape: bf16[4,49], index: 1, kind: input, shape index: {}]   ;;  %s363_s3 = inlined_call_operand.vmem [shape: bf16[4,512], index: 3, kind: output, shape index: {}]  }
   0x1   :  { %v265_v0 = vld [vmem:[%s360_s0 + $0x4] ss:$16 sps:$4 sm:$0xff]   ;;  %157 = vmatprep.mubr.bf16.mxu0 %v287_v1  ;;  %198 = vmatprep.mubr.bf16.mxu1 %v287_v1  ;;  %v267_v2 = vld [vmem:[%s360_s0 + $0xc] ss:$16 sps:$4 sm:$0xff]   ;;  %v269_v3 = vld [vmem:[%s360_s0] ss:$16 sps:$4 sm:$0xff]   ;;  %v222_v27 = vunpack.c.l.s4 %v288_v26  ;;  %v224_v28 = vlaneseq }
   0x2   :  { %264 = vset.pattern.permute.xlu0 %v287_v1  ;;  %125 = vmatprep.subr.bf16.mxu0 %v265_v0  ;;  %v270_v4 = vld [vmem:[%s360_s0 + $0x8] ss:$16 sps:$4 sm:$0xff]   ;;  %v271_v5 = vld [vmem:[%s360_s0 + $0x24] ss:$16 sps:$4 sm:$0xff]   ;;  %v273_v6 = vld [vmem:[%s360_s0 + $0x2c] ss:$16 sps:$4 sm:$0xff]  }
   0x3   :  { %166 = vmatprep.subr.bf16.mxu1 %v267_v2  ;;  %126 = vmatpush1.bf16.msra.mxu0 %v269_v3  ;;  %v275_v7 = vld [vmem:[%s360_s0 + $0x20] ss:$16 sps:$4 sm:$0xff]   ;;  %v276_v8 = vld [vmem:[%s360_s0 + $0x28] ss:$16 sps:$4 sm:$0xff]   ;;  %v277_v9 = vld [vmem:[%s360_s0 + $0x44] ss:$16 sps:$4 sm:$0xff]   ;;  %v223_v32 = vunpack.c.0.s8 %v222_v27 }
   0x4   :  { %167 = vmatpush1.bf16.msra.mxu1 %v270_v4  ;;  %127 = vmatprep.subr.bf16.mxu0 %v271_v5  ;;  %v279_v10 = vld [vmem:[%s360_s0 + $0x4c] ss:$16 sps:$4 sm:$0xff]   ;;  %v281_v11 = vld [vmem:[%s360_s0 + $0x40] ss:$16 sps:$4 sm:$0xff]   ;;  %v112_v12 = vsel %vm110_vm0, 65535, %v287_v1  ;;  %v225_v33 = vshrl.u32 %v224_v28, 7 }
   0x5   :  { %168 = vmatprep.subr.bf16.mxu1 %v273_v6  ;;  %v282_v13 = vld [vmem:[%s360_s0 + $0x48] ss:$16 sps:$4 sm:$0xff]   ;;  %v28_v14 = vld [vmem:[%s360_s0 + $0x60] sm:$0x11] }
   0x6   :  { %v29_v15 = vld [vmem:[%s360_s0 + $0x68] sm:$0x11]  ;;  %v255_v16 = vcombine.high %v28_v14, %v28_v14  ;;  %v254_v18 = vcombine.low %v28_v14, %v28_v14  ;;  %v30_v19 = vld [vmem:[%s361_s2] sm:$0xf]  ;;  %v226_v47 = vsub.s32 %v223_v32, %v225_v33 }
   0x7   :  { %128 = vmatpush1.bf16.msra.mxu0 %v275_v7  ;;  %v257_v17 = vcombine.high %v29_v15, %v29_v15  ;;  %v256_v20 = vcombine.low %v29_v15, %v29_v15  ;;  %33 = vperm.xlu0 %264, %v30_v19   ;;  %v15_v25 = vld [vmem:[%s362_s1] sm:$0x3] }
   0x8   :  { %169 = vmatpush1.bf16.msra.mxu1 %v276_v8  ;;  %129 = vmatprep.subr.bf16.mxu0 %v277_v9  ;;  %v117_v21 = vand.u32 %v255_v16, %v112_v12  ;;  %v114_v23 = vand.u32 %v254_v18, %v112_v12 }
   0x9   :  { %170 = vmatprep.subr.bf16.mxu1 %v279_v10  ;;  %v123_v22 = vand.u32 %v257_v17, %v112_v12  ;;  %v120_v24 = vand.u32 %v256_v20, %v112_v12 }
   0xb   :  { %130 = vmatpush1.bf16.msra.mxu0 %v281_v11 }
   0xc   :  { %171 = vmatpush1.bf16.msra.mxu1 %v282_v13  ;;  %131 = vmatprep.subr.bf16.mxu0 %v117_v21 }
   0xd   :  { %172 = vmatprep.subr.bf16.mxu1 %v123_v22 }
   0xf   :  { %132 = vmatpush1.bf16.msra.mxu0 %v114_v23 }
  0x10   :  { %173 = vmatpush1.bf16.msra.mxu1 %v120_v24 }
  0x12   :  { %258 = vmatmul.mubr.msk.bf16.vlgmr.msra.gmra.mrb[0].mxu0 %vm106_vm1, %v15_v25 }
  0x13   :  { %259 = vmatmul.mubr.msk.bf16.vlgmr.msra.gmra.mrb[0].mxu1 %vm106_vm1, %v15_v25 }
  0x86   :  { %v34_v29 = vpop.permute.xlu0 %33 }
  0xe5   :  { %v159_v30 = vpop.f32.mrb[0].mxu0 }
  0xe6   :  { %v200_v31 = vpop.f32.mrb[0].mxu1  ;;  %v160_v34 = vadd.f32 %v159_v30, %v34_v29  ;;  %v161_v36 = vpop.f32.mrb[1].mxu0 }
  0xe7   :  { %v201_v35 = vadd.f32 %v200_v31, %v34_v29  ;;  %v202_v37 = vpop.f32.mrb[1].mxu1  ;;  %v162_v38 = vadd.f32 %v161_v36, %v34_v29  ;;  %v163_v40 = vpop.f32.mrb[2].mxu0 }
  0xe8   :  { %v203_v39 = vadd.f32 %v202_v37, %v34_v29  ;;  %v204_v41 = vpop.f32.mrb[2].mxu1  ;;  %v207_v42 = vmax.f32 %v160_v34, 0.0  ;;  %v164_v44 = vpop.f32.mrb[3].mxu0 }
  0xe9   :  { %v209_v43 = vmax.f32 %v201_v35, 0.0  ;;  %v205_v45 = vpop.f32.mrb[3].mxu1  ;;  %v208_v46 = vmax.f32 %v162_v38, 0.0 }
  0xea   :  { %v210_v48 = vmax.f32 %v203_v39, 0.0 }
  0xeb   :  { %v260_v49 = vpack.c.bf16 %v208_v46, %v207_v42 }
  0xec   :  { %v261_v50 = vpack.c.bf16 %v210_v48, %v209_v43 }
  0xed   :  { %v227_v51 = vrot.slane %v260_v49, %v226_v47 }
  0xee   :  { %v234_v52 = vrot.slane %v261_v50, %v226_v47 }
  0xf0   :  { %v235_v53 = vcombine.low %v227_v51, %v234_v52 }
  0xf2   :  { %237 = vst [vmem:[%s363_s3] sm:$0xff] %v235_v53 }

// kernel: stride_res_bn_encoder_c1.7
= control target key start
LH: loop header
LB: loop body
LE: loop exit
PB: predicated region body
PF: predicated region fallthrough
CT: control target
= control target key end

     0   :  { %v122_v0 = vmov 0.0   ;;  %vm123_vm0 = vmmov 0   ;;  %v124_v2 = vmov 0   ;;  %vm46_vm1 = vcmask 1041408   ;;  %s163_s0 = inlined_call_operand.vmem [shape: bf16[36,128], index: 0, kind: input, shape index: {}]   ;;  %s164_s2 = inlined_call_operand.vmem [shape: f32[8,1], index: 2, kind: input, shape index: {}]   ;;  %s165_s1 = inlined_call_operand.vmem [shape: bf16[8,36], index: 1, kind: input, shape index: {}]   ;;  %s166_s3 = inlined_call_operand.vmem [shape: bf16[8,128], index: 3, kind: output, shape index: {}]  }
   0x1   :  { %105 = vmatprep.subr.bf16.mxu0 %v122_v0  ;;  %v119_v1 = vld [vmem:[%s163_s0] sm:$0xff]   ;;  %111 = vmatprep.mubr.msk.bf16.mxu0 %vm123_vm0, %v122_v0  ;;  %v120_v3 = vld [vmem:[%s163_s0 + $0x8] sm:$0xff]   ;;  %v121_v5 = vld [vmem:[%s163_s0 + $0x10] ss:$0 sps:$4 sm:$0x33]   ;;  %vm42_vm2 = vcmask 293888  }
   0x2   :  { %118 = vset.pattern.permute.xlu0 %v124_v2  ;;  %106 = vmatpush3.bf16.msra.mxu0 %v119_v1  ;;  %v21_v4 = vld [vmem:[%s164_s2] sm:$0xff]  ;;  %v48_v6 = vsel %vm46_vm1, %v121_v5, 0 }
   0x3   :  { %107 = vmatprep.subr.bf16.mxu0 %v122_v0  ;;  %24 = vperm.xlu0 %118, %v21_v4   ;;  %v15_v7 = vld [vmem:[%s165_s1] sm:$0xf] }
   0x6   :  { %108 = vmatpush3.bf16.msra.mxu0 %v120_v3 }
   0x7   :  { %109 = vmatprep.subr.bf16.mxu0 %v122_v0 }
   0xa   :  { %110 = vmatpush3.bf16.msra.mxu0 %v48_v6 }
   0xd   :  { %112 = vmatmul.mubr.msk.bf16.vlgmr.msra.gmra.mrb[0].mxu0 %vm42_vm2, %v15_v7 }
  0x82   :  { %v25_v8 = vpop.permute.xlu0 %24 }
  0xe0   :  { %v84_v9 = vpop.f32.mrb[0].mxu0 }
  0xe1   :  { %v85_v10 = vadd.f32 %v84_v9, %v25_v8  ;;  %v113_v11 = vpop.f32.mrb[1].mxu0 }
  0xe2   :  { %v87_v12 = vpop.f32.mrb[2].mxu0 }
  0xe3   :  { %v90_v13 = vmax.f32 %v85_v10, 0.0  ;;  %v114_v14 = vpop.f32.mrb[3].mxu0 }
  0xe5   :  { %v91_v15 = vpack.c.bf16 %v90_v13, %v90_v13 }
  0xe7   :  { %92 = vst [vmem:[%s166_s3] sm:$0xf] %v91_v15 }

// kernel: stride_res_bn_encoder_c1.8
= control target key start
LH: loop header
LB: loop body
LE: loop exit
PB: predicated region body
PF: predicated region fallthrough
CT: control target
= control target key end

     0   :  { %v151_v0 = vmov 0.0   ;;  %vm152_vm0 = vmmov 0   ;;  %v153_v2 = vmov 0   ;;  %vm65_vm1 = vcmask 1045504   ;;  %s198_s0 = inlined_call_operand.vmem [shape: bf16[76,128], index: 0, kind: input, shape index: {}]   ;;  %s199_s2 = inlined_call_operand.vmem [shape: f32[8,1], index: 2, kind: input, shape index: {}]   ;;  %s200_s1 = inlined_call_operand.vmem [shape: bf16[8,76], index: 1, kind: input, shape index: {}]   ;;  %s201_s3 = inlined_call_operand.vmem [shape: bf16[8,128], index: 3, kind: output, shape index: {}]  }
   0x1   :  { %128 = vmatprep.subr.bf16.mxu0 %v151_v0  ;;  %v146_v1 = vld [vmem:[%s198_s0] sm:$0xff]   ;;  %138 = vmatprep.mubr.msk.bf16.mxu0 %vm152_vm0, %v151_v0  ;;  %v147_v3 = vld [vmem:[%s198_s0 + $0x8] sm:$0xff]   ;;  %v148_v5 = vld [vmem:[%s198_s0 + $0x10] sm:$0xff]   ;;  %vm61_vm2 = vcmask 621568  }
   0x2   :  { %145 = vset.pattern.permute.xlu0 %v153_v2  ;;  %129 = vmatpush3.bf16.msra.mxu0 %v146_v1  ;;  %v26_v4 = vld [vmem:[%s199_s2] sm:$0xff]  ;;  %v149_v6 = vld [vmem:[%s198_s0 + $0x18] sm:$0xff]  }
   0x3   :  { %130 = vmatprep.subr.bf16.mxu0 %v151_v0  ;;  %29 = vperm.xlu0 %145, %v26_v4   ;;  %v150_v7 = vld [vmem:[%s198_s0 + $0x20] sm:$0x3f]  }
   0x4   :  { %v67_v8 = vsel %vm65_vm1, %v150_v7, 0  ;;  %v15_v9 = vld [vmem:[%s200_s1] sm:$0xf] }
   0x6   :  { %131 = vmatpush3.bf16.msra.mxu0 %v147_v3 }
   0x7   :  { %132 = vmatprep.subr.bf16.mxu0 %v151_v0 }
   0xa   :  { %133 = vmatpush3.bf16.msra.mxu0 %v148_v5 }
   0xb   :  { %134 = vmatprep.subr.bf16.mxu0 %v151_v0 }
   0xe   :  { %135 = vmatpush3.bf16.msra.mxu0 %v149_v6 }
   0xf   :  { %136 = vmatprep.subr.bf16.mxu0 %v151_v0 }
  0x12   :  { %137 = vmatpush3.bf16.msra.mxu0 %v67_v8 }
  0x15   :  { %139 = vmatmul.mubr.msk.bf16.vlgmr.msra.gmra.mrb[0].mxu0 %vm61_vm2, %v15_v9 }
  0x82   :  { %v30_v10 = vpop.permute.xlu0 %29 }
  0xe8   :  { %v103_v11 = vpop.f32.mrb[0].mxu0 }
  0xe9   :  { %v104_v12 = vadd.f32 %v103_v11, %v30_v10  ;;  %v140_v13 = vpop.f32.mrb[1].mxu0 }
  0xea   :  { %v106_v14 = vpop.f32.mrb[2].mxu0 }
  0xeb   :  { %v109_v15 = vmax.f32 %v104_v12, 0.0  ;;  %v141_v16 = vpop.f32.mrb[3].mxu0 }
  0xed   :  { %v110_v17 = vpack.c.bf16 %v109_v15, %v109_v15 }
  0xef   :  { %111 = vst [vmem:[%s201_s3] sm:$0xf] %v110_v17 }

// kernel: stride_res_bn_encoder_c1.9
= control target key start
LH: loop header
LB: loop body
LE: loop exit
PB: predicated region body
PF: predicated region fallthrough
CT: control target
= control target key end

     0   :  { %v181_v0 = vmov 0.0   ;;  %vm182_vm0 = vmmov 0   ;;  %v183_v2 = vmov 0   ;;  %vm74_vm1 = vcmask 1043456   ;;  %s231_s0 = inlined_call_operand.vmem [shape: bf16[72,128], index: 0, kind: input, shape index: {}]   ;;  %s232_s2 = inlined_call_operand.vmem [shape: f32[16,1], index: 2, kind: input, shape index: {}]   ;;  %s233_s1 = inlined_call_operand.vmem [shape: bf16[16,72], index: 1, kind: input, shape index: {}]   ;;  %s234_s3 = inlined_call_operand.vmem [shape: bf16[16,128], index: 3, kind: output, shape index: {}]  }
   0x1   :  { %157 = vmatprep.subr.bf16.mxu0 %v181_v0  ;;  %v175_v1 = vld [vmem:[%s231_s0] sm:$0xff]   ;;  %167 = vmatprep.mubr.msk.bf16.mxu0 %vm182_vm0, %v181_v0  ;;  %v176_v3 = vld [vmem:[%s231_s0 + $0x8] sm:$0xff]   ;;  %v177_v5 = vld [vmem:[%s231_s0 + $0x10] sm:$0xff]   ;;  %vm70_vm2 = vcmask 588800  }
   0x2   :  { %174 = vset.pattern.permute.xlu0 %v183_v2  ;;  %158 = vmatpush3.bf16.msra.mxu0 %v175_v1  ;;  %v26_v4 = vld [vmem:[%s232_s2] sm:$0xff]  ;;  %v27_v6 = vld [vmem:[%s232_s2 + $0x8] sm:$0xff]  ;;  %v178_v7 = vld [vmem:[%s231_s0 + $0x18] sm:$0xff]  }
   0x3   :  { %159 = vmatprep.subr.bf16.mxu0 %v181_v0  ;;  %30 = vperm.xlu0 %174, %v26_v4   ;;  %v179_v8 = vld [vmem:[%s231_s0 + $0x20] ss:$0 sps:$4 sm:$0xff]  }
   0x4   :  { %v76_v9 = vsel %vm74_vm1, %v179_v8, 0  ;;  %v180_v10 = vld [vmem:[%s233_s1] sm:$0xff]  }
   0x6   :  { %160 = vmatpush3.bf16.msra.mxu0 %v176_v3 }
   0x7   :  { %161 = vmatprep.subr.bf16.mxu0 %v181_v0  ;;  %35 = vperm.xlu0 %174, %v27_v6  }
   0xa   :  { %162 = vmatpush3.bf16.msra.mxu0 %v177_v5 }
   0xb   :  { %163 = vmatprep.subr.bf16.mxu0 %v181_v0 }
   0xe   :  { %164 = vmatpush3.bf16.msra.mxu0 %v178_v7 }
   0xf   :  { %165 = vmatprep.subr.bf16.mxu0 %v181_v0 }
  0x12   :  { %166 = vmatpush3.bf16.msra.mxu0 %v76_v9 }
  0x15   :  { %168 = vmatmul.mubr.msk.bf16.vlgmr.msra.gmra.mrb[0].mxu0 %vm70_vm2, %v180_v10 }
  0x82   :  { %v31_v11 = vpop.permute.xlu0 %30 }
  0x86   :  { %v36_v15 = vpop.permute.xlu0 %35 }
  0xe8   :  { %v112_v12 = vpop.f32.mrb[0].mxu0 }
  0xe9   :  { %v113_v13 = vadd.f32 %v112_v12, %v31_v11  ;;  %v169_v14 = vpop.f32.mrb[1].mxu0 }
  0xea   :  { %v115_v16 = vpop.f32.mrb[2].mxu0 }
  0xeb   :  { %v116_v17 = vadd.f32 %v115_v16, %v36_v15  ;;  %v170_v18 = vpop.f32.mrb[3].mxu0  ;;  %v119_v19 = vmax.f32 %v113_v13, 0.0 }
  0xed   :  { %v120_v20 = vmax.f32 %v116_v17, 0.0 }
  0xef   :  { %v149_v21 = vpack.c.bf16 %v120_v20, %v119_v19 }
  0xf1   :  { %150 = vst [vmem:[%s234_s3] sm:$0xff] %v149_v21  }

// kernel: stride_res_bn_encoder_c1.10
= control target key start
LH: loop header
LB: loop body
LE: loop exit
PB: predicated region body
PF: predicated region fallthrough
CT: control target
= control target key end

     0   :  { %v216_v0 = vmov 0   ;;  %vm114_vm0 = vcmask 195584   ;;  %vm118_vm1 = vcmask 1043456   ;;  %s282_s0 = inlined_call_operand.vmem [shape: bf16[152,128], index: 0, kind: input, shape index: {}]   ;;  %s283_s1 = inlined_call_operand.vmem [shape: bf16[16,152], index: 1, kind: input, shape index: {}]   ;;  %s284_s2 = inlined_call_operand.vmem [shape: f32[16,1], index: 2, kind: input, shape index: {}]   ;;  %s285_s3 = inlined_call_operand.vmem [shape: bf16[16,128], index: 3, kind: output, shape index: {}]  }
   0x1   :  { %122 = vmatprep.subr.bf16.mxu0 %v216_v0  ;;  %v203_v1 = vld [vmem:[%s282_s0] sm:$0xff]   ;;  %202 = vset.pattern.permute.xlu0 %v216_v0  ;;  %v204_v2 = vld [vmem:[%s282_s0 + $0x8] sm:$0xff]   ;;  %v205_v3 = vld [vmem:[%s282_s0 + $0x10] sm:$0xff]  }
   0x2   :  { %123 = vmatpush1.bf16.msra.mxu0 %v203_v1  ;;  %v206_v4 = vld [vmem:[%s282_s0 + $0x18] sm:$0xff]   ;;  %v215_v5 = vld [vmem:[%s283_s1 + $0x4] ss:$8 sps:$4 sm:$0xff]   ;;  %v209_v10 = vld [vmem:[%s282_s0 + $0x30] sm:$0xff]  }
   0x3   :  { %124 = vmatprep.subr.bf16.mxu0 %v216_v0  ;;  %v36_v6 = vld [vmem:[%s284_s2] sm:$0xff]  ;;  %191 = vmatprep.mubr.msk.bf16.mxu0 %vm114_vm0, %v215_v5  ;;  %v37_v7 = vld [vmem:[%s284_s2 + $0x8] sm:$0xff]  ;;  %v210_v11 = vld [vmem:[%s282_s0 + $0x38] sm:$0xff]  }
   0x4   :  { %40 = vperm.xlu0 %202, %v36_v6   ;;  %v207_v8 = vld [vmem:[%s282_s0 + $0x20] sm:$0xff]   ;;  %v208_v9 = vld [vmem:[%s282_s0 + $0x28] sm:$0xff]  }
   0x5   :  { %v211_v12 = vld [vmem:[%s282_s0 + $0x40] sm:$0xff]   ;;  %v212_v13 = vld [vmem:[%s282_s0 + $0x48] ss:$0 sps:$4 sm:$0xff]  }
   0x6   :  { %125 = vmatpush1.bf16.msra.mxu0 %v204_v2  ;;  %v120_v14 = vsel %vm118_vm1, %v212_v13, 0  ;;  %v213_v15 = vld [vmem:[%s283_s1] ss:$8 sps:$4 sm:$0xff]  }
   0x7   :  { %126 = vmatprep.subr.bf16.mxu0 %v216_v0 }
   0x8   :  { %45 = vperm.xlu0 %202, %v37_v7  }
   0xa   :  { %127 = vmatpush1.bf16.msra.mxu0 %v205_v3 }
   0xb   :  { %128 = vmatprep.subr.bf16.mxu0 %v216_v0 }
   0xe   :  { %129 = vmatpush1.bf16.msra.mxu0 %v206_v4 }
   0xf   :  { %130 = vmatprep.subr.bf16.mxu0 %v216_v0 }
  0x12   :  { %131 = vmatpush1.bf16.msra.mxu0 %v207_v8 }
  0x13   :  { %132 = vmatprep.subr.bf16.mxu0 %v216_v0 }
  0x16   :  { %133 = vmatpush1.bf16.msra.mxu0 %v208_v9 }
  0x17   :  { %134 = vmatprep.subr.bf16.mxu0 %v216_v0 }
  0x1a   :  { %135 = vmatpush1.bf16.msra.mxu0 %v209_v10 }
  0x1b   :  { %136 = vmatprep.subr.bf16.mxu0 %v216_v0 }
  0x1e   :  { %137 = vmatpush1.bf16.msra.mxu0 %v210_v11 }
  0x1f   :  { %138 = vmatprep.subr.bf16.mxu0 %v216_v0 }
  0x22   :  { %139 = vmatpush1.bf16.msra.mxu0 %v211_v12 }
  0x23   :  { %140 = vmatprep.subr.bf16.mxu0 %v216_v0 }
  0x26   :  { %141 = vmatpush1.bf16.msra.mxu0 %v120_v14 }
  0x29   :  { %155 = vmatmul.mubr.bf16.vlgmr.msra.gmra.mrb[0].mxu0 %v213_v15 }
  0x83   :  { %v41_v16 = vpop.permute.xlu0 %40 }
  0x87   :  { %v46_v20 = vpop.permute.xlu0 %45 }
  0xfc   :  { %v156_v17 = vpop.f32.mrb[0].mxu0 }
  0xfd   :  { %v157_v18 = vadd.f32 %v156_v17, %v41_v16  ;;  %v158_v19 = vpop.f32.mrb[1].mxu0 }
  0xfe   :  { %v159_v21 = vpop.f32.mrb[2].mxu0 }
  0xff   :  { %v160_v22 = vadd.f32 %v159_v21, %v46_v20  ;;  %v161_v23 = vpop.f32.mrb[3].mxu0  ;;  %v163_v24 = vmax.f32 %v157_v18, 0.0 }
 0x101   :  { %v164_v25 = vmax.f32 %v160_v22, 0.0 }
 0x103   :  { %v199_v26 = vpack.c.bf16 %v164_v25, %v163_v24 }
 0x105   :  { %200 = vst [vmem:[%s285_s3] sm:$0xff] %v199_v26  }

// kernel: stride_res_bn_encoder_c1.11
= control target key start
LH: loop header
LB: loop body
LE: loop exit
PB: predicated region body
PF: predicated region fallthrough
CT: control target
= control target key end

     0   :  { %v269_v0 = vmov 0   ;;  %vm118_vm0 = vcmask 130048   ;;  %v270_v14 = vmov 0.0   ;;  %vm271_vm1 = vmmov 0   ;;  %s352_s0 = inlined_call_operand.vmem [shape: bf16[144,128], index: 0, kind: input, shape index: {}]   ;;  %s353_s1 = inlined_call_operand.vmem [shape: bf16[16,144], index: 1, kind: input, shape index: {}]   ;;  %s354_s2 = inlined_call_operand.vmem [shape: f32[16,1], index: 2, kind: input, shape index: {}]   ;;  %s355_s4 = inlined_call_operand.<no memory space> [shape: f32[1,1], index: 4, kind: input, shape index: {}]   ;;  %s356_s3 = inlined_call_operand.vmem [shape: bf16[1,16], index: 3, kind: input, shape index: {}]   ;;  %s357_s5 = inlined_call_operand.vmem [shape: f32[1,128], index: 5, kind: output, shape index: {}]  }
   0x1   :  { %122 = vmatprep.subr.bf16.mxu0 %v269_v0  ;;  %v255_v1 = vld [vmem:[%s352_s0] sm:$0xff]   ;;  %253 = vset.pattern.permute.xlu0 %v269_v0  ;;  %v256_v2 = vld [vmem:[%s352_s0 + $0x8] sm:$0xff]   ;;  %v257_v3 = vld [vmem:[%s352_s0 + $0x10] sm:$0xff]   ;;  %v10_v15 = vstv %s355_s4  ;;  %v173_v29 = vlaneseq }
   0x2   :  { %254 = vset.pattern.permute.xlu1 %v269_v0  ;;  %123 = vmatpush1.bf16.msra.mxu0 %v255_v1  ;;  %v258_v4 = vld [vmem:[%s352_s0 + $0x18] sm:$0xff]   ;;  %v266_v5 = vld [vmem:[%s353_s1 + $0x4] ss:$8 sps:$4 sm:$0xff]   ;;  %v261_v10 = vld [vmem:[%s352_s0 + $0x30] sm:$0xff]   ;;  %11 = vst [vmem:[#allocation2] sm:$0x1] %v10_v15 }
   0x3   :  { %124 = vmatprep.subr.bf16.mxu0 %v269_v0  ;;  %v43_v6 = vld [vmem:[%s354_s2] sm:$0xff]  ;;  %240 = vmatprep.mubr.msk.bf16.mxu0 %vm118_vm0, %v266_v5  ;;  %v44_v7 = vld [vmem:[%s354_s2 + $0x8] sm:$0xff]  ;;  %v262_v11 = vld [vmem:[%s352_s0 + $0x38] sm:$0xff]   ;;  %v174_v30 = vshrl.u32 %v173_v29, 7 }
   0x4   :  { %47 = vperm.xlu0 %253, %v43_v6   ;;  %v259_v8 = vld [vmem:[%s352_s0 + $0x20] sm:$0xff]   ;;  %v260_v9 = vld [vmem:[%s352_s0 + $0x28] sm:$0xff]   ;;  %244 = vmatprep.subr.bf16.mxu1 %v270_v14 }
   0x5   :  { %v263_v12 = vld [vmem:[%s352_s0 + $0x40] sm:$0xff]   ;;  %246 = vmatprep.mubr.msk.bf16.mxu1 %vm271_vm1, %v270_v14  ;;  %v175_v31 = vsub.s32 0, %v174_v30 }
   0x6   :  { %125 = vmatpush1.bf16.msra.mxu0 %v256_v2  ;;  %v264_v13 = vld [vmem:[%s353_s1] ss:$8 sps:$4 sm:$0xff]  }
   0x7   :  { %126 = vmatprep.subr.bf16.mxu0 %v269_v0  ;;  %v165_v28 = vld [vmem:[%s356_s3] sm:$0x1] }
   0x8   :  { %52 = vperm.xlu0 %253, %v44_v7  }
   0x9   :  { %v167_v16 = vld [vmem:[#allocation2] sm:$0x1] }
   0xa   :  { %127 = vmatpush1.bf16.msra.mxu0 %v257_v3  ;;  %170 = vperm.xlu1 %254, %v167_v16  }
   0xb   :  { %128 = vmatprep.subr.bf16.mxu0 %v269_v0 }
   0xe   :  { %129 = vmatpush1.bf16.msra.mxu0 %v258_v4 }
   0xf   :  { %130 = vmatprep.subr.bf16.mxu0 %v269_v0 }
  0x12   :  { %131 = vmatpush1.bf16.msra.mxu0 %v259_v8 }
  0x13   :  { %132 = vmatprep.subr.bf16.mxu0 %v269_v0 }
  0x16   :  { %133 = vmatpush1.bf16.msra.mxu0 %v260_v9 }
  0x17   :  { %134 = vmatprep.subr.bf16.mxu0 %v269_v0 }
  0x1a   :  { %135 = vmatpush1.bf16.msra.mxu0 %v261_v10 }
  0x1b   :  { %136 = vmatprep.subr.bf16.mxu0 %v269_v0 }
  0x1e   :  { %137 = vmatpush1.bf16.msra.mxu0 %v262_v11 }
  0x1f   :  { %138 = vmatprep.subr.bf16.mxu0 %v269_v0 }
  0x22   :  { %139 = vmatpush1.bf16.msra.mxu0 %v263_v12 }
  0x25   :  { %155 = vmatmul.mubr.bf16.vlgmr.msra.gmra.mrb[0].mxu0 %v264_v13 }
  0x83   :  { %v48_v17 = vpop.permute.xlu0 %47 }
  0x87   :  { %v53_v21 = vpop.permute.xlu0 %52 }
  0x89   :  { %v171_v32 = vpop.permute.xlu1 %170 }
  0x8a   :  { %v176_v33 = vrot.slane %v171_v32, %v175_v31 }
  0xf8   :  { %v156_v18 = vpop.f32.mrb[0].mxu0 }
  0xf9   :  { %v157_v19 = vadd.f32 %v156_v18, %v48_v17  ;;  %v158_v20 = vpop.f32.mrb[1].mxu0 }
  0xfa   :  { %v159_v22 = vpop.f32.mrb[2].mxu0 }
  0xfb   :  { %v160_v23 = vadd.f32 %v159_v22, %v53_v21  ;;  %v161_v24 = vpop.f32.mrb[3].mxu0  ;;  %v163_v25 = vmax.f32 %v157_v19, 0.0 }
  0xfd   :  { %v164_v26 = vmax.f32 %v160_v23, 0.0 }
  0xff   :  { %v166_v27 = vpack.c.bf16 %v164_v26, %v163_v25 }
 0x101   :  { %245 = vmatpush3.bf16.msra.mxu1 %v166_v27 }
 0x104   :  { %247 = vmatmul.mubr.msk.bf16.vlgmr.msra.gmra.mrb[0].mxu1 %vm118_vm0, %v165_v28 }
 0x1d7   :  { %v214_v34 = vpop.f32.mrb[0].mxu1 }
 0x1d8   :  { %v215_v35 = vadd.f32 %v214_v34, %v176_v33  ;;  %v248_v36 = vpop.f32.mrb[1].mxu1 }
 0x1d9   :  { %v217_v37 = vpop.f32.mrb[2].mxu1 }
 0x1da   :  { %v220_v38 = vmul.f32 0.5, %v215_v35  ;;  %v249_v39 = vpop.f32.mrb[3].mxu1 }
 0x1dc   :  { %267 = vtanh.f32 %v220_v38 }
 0x1e6   :  { %v268_v40 = vpop.eup %267 }
 0x1e7   :  { %v222_v41 = vadd.f32 1.0, %v268_v40 }
 0x1e9   :  { %v223_v42 = vmul.f32 0.5, %v222_v41 }
 0x1eb   :  { %224 = vst [vmem:[%s357_s5] sm:$0x1] %v223_v42 }

</bundles_post_ra>
